<compile_context>
chip_gen: v5e
topology: v5e:2x2
jax: 0.10.0
libtpu: 0.0.40
codegen_flags: <defaults>
</compile_context>

<pallas_src>
import functools
import math

import jax
import jax.numpy as jnp
from jax import lax
from jax.experimental import pallas as pl
from jax.experimental.pallas import tpu as pltpu

_CHUNK = 512  # lanes per epilogue chunk (16 f32 vregs of h at D=32)


def _mlp_abs_kernel(x_ref, w1_ref, b1_ref, w2_ref, b2_ref, o_ref, *, chunk, num_chunks):
    # x_ref:  (TM, D)  row-major tile of input rows (rows -> lanes after the in-kernel
    #                  transposed contraction)
    # w1_ref: (D, D)   first Linear weight, PyTorch (out, in) layout
    # b1_ref: (D, 1)   first Linear bias (feature-major column, broadcast along lanes)
    # w2_ref: (D, 1)   second Linear weight as a column (broadcast along lanes)
    # b2_ref: (1, 1)   second Linear bias (SMEM scalar)
    # o_ref:  (1, TM)  |mlp(x)| for the TM rows, lane-dense
    w1 = w1_ref[...]
    b1 = b1_ref[...]
    w2 = w2_ref[...]
    b2 = b2_ref[0, 0]

    # Fully unrolled chunk loop with static slices: each chunk's h lives entirely in
    # vregs (no VMEM round trip of the full (D, TM) intermediate).
    for c in range(num_chunks):
        lo = c * chunk
        hi = lo + chunk
        x_c = x_ref[lo:hi, :]                                     # (chunk, D)
        # h^T = W1 @ x_c^T on the MXU: contract W1 dim 1 with x_c dim 1 -> (D, chunk).
        h = lax.dot_general(
            w1, x_c,
            dimension_numbers=(((1,), (1,)), ((), ())),
            preferred_element_type=jnp.float32)
        h = jnp.maximum(h + b1, 0.0)                              # bias + ReLU (VPU)
        y = jnp.sum(h * w2, axis=0, keepdims=True)                # (1, chunk), XLU reduce
        o_ref[:, lo:hi] = jnp.abs(y + b2)                         # lane-dense store


def meta_task_mlp_forward(x, w1, b1, w2, b2, *, tile_m=8192, matmul_dtype=None):
    """use_softmax=False path: torch.abs(mlp(x).squeeze()) for x of shape (B, N, D).

    Parameters are in PyTorch nn.Linear layout: w1 (D, D) [out, in], b1 (D,),
    w2 (1, D) [out, in], b2 (1,).
    """
    B, N, D = x.shape
    M = B * N
    if tile_m % _CHUNK != 0:
        raise ValueError(f"tile_m must be a multiple of {_CHUNK}")

    # Tile size: big enough to amortize per-grid-step pipeline overhead, small enough to
    # keep >= 2 grid steps (v7x megacore) when M allows it.  For tiny M use one
    # full-array block (exempt from the (8,128) block-shape rule).
    tm = min(tile_m, _CHUNK * max(1, pl.cdiv(M, 2 * _CHUNK)))
    if tm >= M:
        tm = M
    num_steps = pl.cdiv(M, tm)
    chunk = min(_CHUNK, tm)
    assert tm % chunk == 0
    num_chunks = tm // chunk

    # (B, N, D) -> (M, D) is a pure view; no extra HBM pass (unlike the old transpose+pad).
    x2 = x.reshape(M, D)
    w1_k = w1
    if matmul_dtype is not None:
        # Only worthwhile on v6e/v7x when x already arrives in matmul_dtype (a standalone
        # f32 cast would add its own HBM pass); epilogue stays f32.
        x2 = x2.astype(matmul_dtype)
        w1_k = w1_k.astype(matmul_dtype)
    b1_k = b1.reshape(D, 1).astype(jnp.float32)
    w2_k = w2.reshape(D, 1).astype(jnp.float32)
    b2_k = b2.reshape(1, 1).astype(jnp.float32)

    kernel = functools.partial(_mlp_abs_kernel, chunk=chunk, num_chunks=num_chunks)

    bytes_accessed = (x2.size * x2.dtype.itemsize            # stream x once
                      + M * 4                                 # output
                      + w1_k.size * w1_k.dtype.itemsize + (2 * D + 1) * 4)
    cost = pl.CostEstimate(flops=2 * M * D * D + 4 * M * D,
                           transcendentals=0,
                           bytes_accessed=int(bytes_accessed))

    out = pl.pallas_call(
        kernel,
        out_shape=jax.ShapeDtypeStruct((1, M), jnp.float32),
        grid_spec=pltpu.PrefetchScalarGridSpec(
            num_scalar_prefetch=0,
            grid=(num_steps,),
            in_specs=[
                pl.BlockSpec((tm, D), lambda i: (i, 0)),              # x tile (streamed)
                pl.BlockSpec((D, D), lambda i: (0, 0)),               # W1 (resident)
                pl.BlockSpec((D, 1), lambda i: (0, 0)),               # b1 (resident)
                pl.BlockSpec((D, 1), lambda i: (0, 0)),               # w2 column (resident)
                pl.BlockSpec(memory_space=pltpu.MemorySpace.SMEM),    # b2 scalar
            ],
            out_specs=pl.BlockSpec((1, tm), lambda i: (0, i)),        # lane-dense slab
        ),
        compiler_params=pltpu.CompilerParams(
            dimension_semantics=("parallel",)),
        cost_estimate=cost,
    )(x2, w1_k, b1_k, w2_k, b2_k)

    return out[0].reshape(B, N)


def init_params(key, num_loss_weight_dims):
    """nn.Linear-style init, U(-1/sqrt(fan_in), 1/sqrt(fan_in)), PyTorch (out, in) layout."""
    D = num_loss_weight_dims
    k1, k2, k3, k4 = jax.random.split(key, 4)
    bound = 1.0 / math.sqrt(D)
    w1 = jax.random.uniform(k1, (D, D), jnp.float32, -bound, bound)   # (out, in)
    b1 = jax.random.uniform(k2, (D,), jnp.float32, -bound, bound)
    w2 = jax.random.uniform(k3, (1, D), jnp.float32, -bound, bound)   # (out, in)
    b2 = jax.random.uniform(k4, (1,), jnp.float32, -bound, bound)
    return w1, b1, w2, b2


def reference_forward(x, w1, b1, w2, b2):
    """Pure-JAX reference of the use_softmax=False branch (PyTorch Linear semantics)."""
    h = jnp.maximum(jnp.einsum("bnd,ed->bne", x, w1) + b1, 0.0)
    y = jnp.einsum("bne,oe->bno", h, w2) + b2
    return jnp.abs(y[..., 0])


if __name__ == "__main__":
    D = 32  # num_loss_weight_dims
    key = jax.random.PRNGKey(0)
    kx, kx2, kp = jax.random.split(key, 3)
    w1, b1, w2, b2 = init_params(kp, D)

    # Small shape typical of the module's use: (batch, tasks, dims) = (2, 8, 32).
    x_small = jax.random.normal(kx, (2, 8, D), jnp.float32)
    x_small = x_small.at[0, 0, :4].set(0.0)  # exact zeros like the module's mask logic expects
    out_small = jax.block_until_ready(meta_task_mlp_forward(x_small, w1, b1, w2, b2))
    ref_small = reference_forward(x_small, w1, b1, w2, b2)
    assert out_small.shape == (2, 8), out_small.shape
    assert jnp.allclose(out_small, ref_small, atol=1e-4, rtol=1e-4), "small-shape mismatch"

    # Larger shape exercising the multi-step grid, chunked epilogue, and the ragged
    # (un-padded) last block: M = 4000 -> tm = 2048, 2 grid steps, 4 chunks per step.
    x_big = jax.random.normal(kx2, (4, 1000, D), jnp.float32)
    out_big = jax.block_until_ready(meta_task_mlp_forward(x_big, w1, b1, w2, b2))
    ref_big = reference_forward(x_big, w1, b1, w2, b2)
    assert out_big.shape == (4, 1000), out_big.shape
    assert jnp.allclose(out_big, ref_big, atol=1e-4, rtol=1e-4), "large-shape mismatch"

    print("KERNEL_OK")
</pallas_src>

<mosaic_0001>
module attributes {stable_mosaic.version = 11 : i64} {
  func.func @_mlp_abs_kernel(%arg0: i32, %arg1: memref<16x32xf32, #tpu.memory_space<vmem>>, %arg2: memref<32x32xf32, #tpu.memory_space<vmem>>, %arg3: memref<32x1xf32, #tpu.memory_space<vmem>>, %arg4: memref<32x1xf32, #tpu.memory_space<vmem>>, %arg5: memref<1x1xf32, #tpu.memory_space<smem>>, %arg6: memref<1x16xf32, #tpu.memory_space<vmem>>) attributes {dimension_semantics = [#tpu.dimension_semantics<parallel>], iteration_bounds = array<i64: 1>, scalar_prefetch = 0 : i64, scratch_operands = 0 : i64, tpu.core_type = #tpu.core_type<tc>, window_params = [{transform_indices = @transform_0, window_bounds = array<i64: 16, 32>}, {pipeline_mode = #tpu.pipeline_mode<synchronous>, transform_indices = @transform_1, window_bounds = array<i64: 32, 32>}, {pipeline_mode = #tpu.pipeline_mode<synchronous>, transform_indices = @transform_2, window_bounds = array<i64: 32, 1>}, {pipeline_mode = #tpu.pipeline_mode<synchronous>, transform_indices = @transform_3, window_bounds = array<i64: 32, 1>}, {transform_indices = @transform_4, window_bounds = array<i64: 1, 1>}, {transform_indices = @transform_5, window_bounds = array<i64: 1, 16>}]} {
    %c0 = arith.constant 0 : index
    %c0_0 = arith.constant 0 : index
    %0 = vector.load %arg2[%c0, %c0_0] : memref<32x32xf32, #tpu.memory_space<vmem>>, vector<32x32xf32>
    %c0_1 = arith.constant 0 : index
    %c0_2 = arith.constant 0 : index
    %1 = vector.load %arg3[%c0_1, %c0_2] : memref<32x1xf32, #tpu.memory_space<vmem>>, vector<32x1xf32>
    %c0_3 = arith.constant 0 : index
    %c0_4 = arith.constant 0 : index
    %2 = vector.load %arg4[%c0_3, %c0_4] : memref<32x1xf32, #tpu.memory_space<vmem>>, vector<32x1xf32>
    %c0_5 = arith.constant 0 : index
    %c0_6 = arith.constant 0 : index
    %3 = memref.load %arg5[%c0_5, %c0_6] : memref<1x1xf32, #tpu.memory_space<smem>>
    %c0_7 = arith.constant 0 : index
    %c0_8 = arith.constant 0 : index
    %4 = vector.load %arg1[%c0_7, %c0_8] : memref<16x32xf32, #tpu.memory_space<vmem>>, vector<16x32xf32>
    %cst = arith.constant dense<0.000000e+00> : vector<32x16xf32>
    %5 = tpu.matmul %0, %4, %cst {dimension_numbers = #tpu.dot_dimension_numbers<[1], [1], [0], [0], [0, 0, 1, 0], [], []>} : vector<32x32xf32>, vector<16x32xf32>, vector<32x16xf32> -> vector<32x16xf32>
    %6 = vector.broadcast %1 : vector<32x1xf32> to vector<32x16xf32>
    %7 = arith.addf %5, %6 : vector<32x16xf32>
    %cst_9 = arith.constant 0.000000e+00 : f32
    %8 = vector.broadcast %cst_9 : f32 to vector<32x16xf32>
    %9 = arith.maximumf %7, %8 : vector<32x16xf32>
    %10 = vector.broadcast %2 : vector<32x1xf32> to vector<32x16xf32>
    %11 = arith.mulf %9, %10 : vector<32x16xf32>
    %cst_10 = arith.constant dense<0.000000e+00> : vector<16xf32>
    %12 = vector.multi_reduction <add>, %11, %cst_10 [0] : vector<32x16xf32> to vector<16xf32>
    %13 = vector.shape_cast %12 : vector<16xf32> to vector<1x16xf32>
    %14 = vector.broadcast %3 : f32 to vector<1x16xf32>
    %15 = arith.addf %13, %14 : vector<1x16xf32>
    %16 = math.absf %15 : vector<1x16xf32>
    %c0_11 = arith.constant 0 : index
    %c0_12 = arith.constant 0 : index
    %17 = vector.load %arg6[%c0_11, %c0_12] : memref<1x16xf32, #tpu.memory_space<vmem>>, vector<1x16xf32>
    tpu.vector_store %arg6[%c0_11, %c0_12], %16 {strides = array<i32>} : memref<1x16xf32, #tpu.memory_space<vmem>>, vector<1x16xf32>,
    return
  }
  func.func @transform_0(%arg0: i32) -> (i32, i32) {
    %c0_i32 = arith.constant 0 : i32
    %c0_i32_0 = arith.constant 0 : i32
    return %arg0, %c0_i32 : i32, i32
  }
  func.func @transform_1(%arg0: i32) -> (i32, i32) {
    %c0_i32 = arith.constant 0 : i32
    %c0_i32_0 = arith.constant 0 : i32
    %c0_i32_1 = arith.constant 0 : i32
    return %c0_i32, %c0_i32_0 : i32, i32
  }
  func.func @transform_2(%arg0: i32) -> (i32, i32) {
    %c0_i32 = arith.constant 0 : i32
    %c0_i32_0 = arith.constant 0 : i32
    %c0_i32_1 = arith.constant 0 : i32
    return %c0_i32, %c0_i32_0 : i32, i32
  }
  func.func @transform_3(%arg0: i32) -> (i32, i32) {
    %c0_i32 = arith.constant 0 : i32
    %c0_i32_0 = arith.constant 0 : i32
    %c0_i32_1 = arith.constant 0 : i32
    return %c0_i32, %c0_i32_0 : i32, i32
  }
  func.func @transform_4(%arg0: i32) -> (i32, i32) {
    %c0_i32 = arith.constant 0 : i32
    %c0_i32_0 = arith.constant 0 : i32
    %c0_i32_1 = arith.constant 0 : i32
    return %c0_i32, %c0_i32_0 : i32, i32
  }
  func.func @transform_5(%arg0: i32) -> (i32, i32) {
    %c0_i32 = arith.constant 0 : i32
    %c0_i32_0 = arith.constant 0 : i32
    return %c0_i32, %arg0 : i32, i32
  }
}

</mosaic_0001>

<bundles_post_ra>
// kernel: tpu_custom_call.1
= control target key start
LH: loop header
LB: loop body
LE: loop exit
PB: predicated region body
PF: predicated region fallthrough
CT: control target
= control target key end

     0   :  { %vm57_vm0 = vcmask 261120   ;;  %v211_v1 = vmov 0   ;;  %s307_s0 = inlined_call_operand.vmem [shape: f32[16,32], index: 0, kind: input, shape index: {}]   ;;  %s308_s1 = inlined_call_operand.vmem [shape: f32[32,32], index: 1, kind: input, shape index: {}]   ;;  %s309_s2 = inlined_call_operand.vmem [shape: f32[32,1], index: 2, kind: input, shape index: {}]   ;;  %s310_s3 = inlined_call_operand.vmem [shape: f32[32,1], index: 3, kind: input, shape index: {}]   ;;  %s311_s4 = inlined_call_operand.<no memory space> [shape: f32[1,1], index: 4, kind: input, shape index: {}]   ;;  %s312_s5 = inlined_call_operand.hbm [shape: f32[1,16], index: 5, kind: output, shape index: {}]  }
   0x1   :  { %v36_v0 = vld [vmem:[%s307_s0 + $0x8] sm:$0xff]  ;;  %183 = vset.pattern.permute.xlu1 %v211_v1  ;;  %182 = vset.pattern.permute.xlu0 %v211_v1  ;;  %v28_v2 = vld [vmem:[%s309_s2 + $0x10] sm:$0xff]  ;;  %v26_v3 = vld [vmem:[%s309_s2] sm:$0xff] }
   0x2   :  { %168 = vmatpush.xpose.msk.msra.mxu0 %vm57_vm0, %v36_v0  ;;  %174 = vmatpush.xpose.msk.msra.mxu1 %vm57_vm0, %v36_v0  ;;  %v35_v4 = vld [vmem:[%s307_s0] sm:$0xff] }
   0x3   :  { %175 = vmatpush.xpose.msk.msra.mxu2 %vm57_vm0, %v36_v0  ;;  %176 = vmatpush.xpose.msk.msra.mxu3 %vm57_vm0, %v36_v0 }
   0x4   :  { %49 = vperm.xlu1 %183, %v28_v2   ;;  %39 = vperm.xlu0 %182, %v26_v3  }
   0x5   :  { %11 = vsyncpa [#allocation4], 0  ;;  %184 = vset.pattern.permute.xlu2 %v211_v1  ;;  %v30_v5 = vld [vmem:[%s310_s3] sm:$0xff]  ;;  %v23_v7 = vld [vmem:[%s308_s1 + $0x8] sm:$0xff]  ;;  %vm133_vm1 = vcmask 130048   ;;  %v147_v51 = vstv %s311_s4  ;;  %s212_s19 = smov [#allocation3]  }
   0x6   :  { %169 = vmatpush.xpose.msk.msra.mxu0 %vm57_vm0, %v35_v4  ;;  %177 = vmatpush.xpose.msk.msra.mxu1 %vm57_vm0, %v35_v4  ;;  %v22_v6 = vld [vmem:[%s308_s1] sm:$0xff]  ;;  %v24_v8 = vld [vmem:[%s308_s1 + $0x10] sm:$0xff]  ;;  %v25_v9 = vld [vmem:[%s308_s1 + $0x18] sm:$0xff]  ;;  %s157_s20 = sshll.u32 %s212_s19, 4  ;;  %s159_s23 = sshll.u32 %s312_s5, 4  ;;  %vm150_vm2 = vcmask 122880   ;;  %s158_s20 = int_to_ptr.vmem [resolvable:$true] %s157_s20  ;;  %s160_s23 = int_to_ptr.hbm [resolvable:$true] %s159_s23 }
   0x7   :  { %178 = vmatpush.xpose.msk.msra.mxu2 %vm57_vm0, %v35_v4  ;;  %179 = vmatpush.xpose.msk.msra.mxu3 %vm57_vm0, %v35_v4  ;;  %v29_v10 = vld [vmem:[%s309_s2 + $0x18] sm:$0xff]  ;;  %v27_v11 = vld [vmem:[%s309_s2 + $0x8] sm:$0xff]  ;;  %v32_v14 = vld [vmem:[%s310_s3 + $0x10] sm:$0xff] }
   0x8   :  { %111 = vperm.xlu2 %184, %v30_v5   ;;  %v31_v12 = vld [vmem:[%s310_s3 + $0x8] sm:$0xff]  ;;  %v33_v13 = vld [vmem:[%s310_s3 + $0x18] sm:$0xff] }
   0x9   :  { %170 = vmatmul.msk.f32.vlgmr.msra.gmra.mxu0 %vm57_vm0, %v22_v6  ;;  %171 = vmatmul.msk.f32.vlgmr.msra.gmra.mxu1 %vm57_vm0, %v23_v7 }
   0xa   :  { %172 = vmatmul.msk.f32.vlgmr.msra.gmra.mxu2 %vm57_vm0, %v24_v8  ;;  %173 = vmatmul.msk.f32.vlgmr.msra.gmra.mxu3 %vm57_vm0, %v25_v9 }
   0xc   :  { %54 = vperm.xlu1 %183, %v29_v10   ;;  %44 = vperm.xlu0 %182, %v27_v11  }
  0x10   :  { %116 = vperm.xlu2 %184, %v31_v12  }
  0x14   :  { %126 = vperm.xlu1 %183, %v33_v13   ;;  %121 = vperm.xlu0 %182, %v32_v14  }
  0x62   :  { %v112_v17 = vpop.permute.xlu2 %111 }
  0x6a   :  { %v117_v26 = vpop.permute.xlu2 %116 }
  0x76   :  { %v50_v15 = vpop.permute.xlu1 %49  ;;  %v40_v16 = vpop.permute.xlu0 %39 }
  0x7e   :  { %v55_v18 = vpop.permute.xlu1 %54  ;;  %v45_v19 = vpop.permute.xlu0 %44 }
  0x86   :  { %v93_v20 = vpop.f32.mrf.mxu0  ;;  %v96_v21 = vpop.f32.mrf.mxu1 }
  0x87   :  { %v94_v22 = vadd.f32 %v93_v20, %v40_v16  ;;  %v97_v23 = vadd.f32 %v96_v21, %v45_v19  ;;  %v127_v37 = vpop.permute.xlu1 %126  ;;  %v122_v38 = vpop.permute.xlu0 %121 }
  0x89   :  { %v105_v24 = vmax.f32 %v94_v22, 0.0  ;;  %v106_v25 = vmax.f32 %v97_v23, 0.0 }
  0x8b   :  { %v129_v27 = vmul.f32 %v112_v17, %v105_v24  ;;  %v130_v28 = vmul.f32 %v117_v26, %v106_v25 }
  0x8d   :  { %v99_v29 = vpop.f32.mrf.mxu2  ;;  %v102_v30 = vpop.f32.mrf.mxu3  ;;  %v134_v33 = vsel %vm133_vm1, %v129_v27, 0.0  ;;  %v135_v34 = vsel %vm133_vm1, %v130_v28, 0.0 }
  0x8e   :  { %v100_v31 = vadd.f32 %v99_v29, %v50_v15  ;;  %v103_v32 = vadd.f32 %v102_v30, %v55_v18  ;;  %v136_v41 = vadd.f32 %v135_v34, %v134_v33 }
  0x90   :  { %v107_v35 = vmax.f32 %v100_v31, 0.0  ;;  %v108_v36 = vmax.f32 %v103_v32, 0.0 }
  0x92   :  { %v131_v39 = vmul.f32 %v122_v38, %v107_v35  ;;  %v132_v40 = vmul.f32 %v127_v37, %v108_v36 }
  0x94   :  { %v137_v42 = vsel %vm133_vm1, %v131_v39, 0.0  ;;  %v139_v44 = vsel %vm133_vm1, %v132_v40, 0.0 }
  0x95   :  { %v138_v43 = vadd.f32 %v137_v42, %v136_v41 }
  0x97   :  { %v140_v45 = vadd.f32 %v139_v44, %v138_v43 }
  0x99   :  { %v141_v46 = vrot.slane %v140_v45, 4 }
  0x9b   :  { %v142_v47 = vadd.f32 %v141_v46, %v140_v45 }
  0x9d   :  { %v143_v48 = vrot.slane %v142_v47, 2 }
  0x9f   :  { %v144_v49 = vadd.f32 %v143_v48, %v142_v47 }
  0xa1   :  { %v145_v50 = vrot.slane %v144_v49, 1 }
  0xa3   :  { %v146_v52 = vadd.f32 %v145_v50, %v144_v49 }
  0xa5   :  { %v148_v53 = vadd.f32 %v147_v51, %v146_v52 }
  0xa7   :  { %v149_v54 = vand.u32 2147483647, %v148_v53 }
  0xa9   :  { %151 = vst.msk [vmem:[#allocation3] sm:$0x1] %vm150_vm2, %v149_v54 }
  0xaa   :  { %162 = dma.vmem_to_hbm [thread:$0]  %s158_s20, 16, %s160_s23, [#allocation4]  }
  0xab   :  { %209 = dma.done.wait [#allocation4], 16  }
  0xac   :  { %210 = vsyncadd [#allocation4], 4294967280 }
  0xad   :  { %167 = vsyncpa [#allocation4], 1 }

</bundles_post_ra>
